<compile_context>
chip_gen: v6e
topology: v6e:2x2x1
jax: 0.10.0
libtpu: 0.0.40
codegen_flags: <defaults>
</compile_context>

<pallas_src>
import jax
import jax.numpy as jnp
from jax.experimental import pallas as pl
from jax.experimental.pallas import tpu as pltpu

# (din, dout) per layer, matching the PyTorch module.
LAYER_DIMS = [(8, 14), (14, 12), (12, 8), (8, 4), (4, 1)]

# Parameter slab layout (f32, zero padded):
#   weights: layer i, W^T i.e. (dout, din), rows [16*i, 16*i+dout), cols [0, din)
#   biases : layer i, (dout,),               rows [80, 80+dout),      col  i
SLAB_ROWS = 96
SLAB_COLS = 128
BIAS_ROW = 80


def _round_up(n, m):
    return ((n + m - 1) // m) * m


def mlp_kernel(p_ref, x_ref, o_ref):
    # x_ref: (8, TB) activations, feature-major / batch-on-lanes.
    # p_ref: (96, 128) packed parameter slab (resident across grid steps).
    z = x_ref[...]                                                  # (8,  TB)

    # hc1: Linear(8 -> 14) + tanh   (out rows padded to 16; pad rows stay 0)
    z = jnp.tanh(
        jnp.dot(p_ref[0:16, 0:8], z, preferred_element_type=jnp.float32)
        + p_ref[BIAS_ROW:BIAS_ROW + 16, 0:1])                       # (16, TB)
    # hc2: Linear(14 -> 12) + tanh  (K padded to 16; padded cols are zero)
    z = jnp.tanh(
        jnp.dot(p_ref[16:32, 0:16], z, preferred_element_type=jnp.float32)
        + p_ref[BIAS_ROW:BIAS_ROW + 16, 1:2])                       # (16, TB)
    # hc3: Linear(12 -> 8) + tanh   (exact 8 output rows -> one sublane set)
    z = jnp.tanh(
        jnp.dot(p_ref[32:40, 0:16], z, preferred_element_type=jnp.float32)
        + p_ref[BIAS_ROW:BIAS_ROW + 8, 2:3])                        # (8,  TB)
    # hc4: Linear(8 -> 4) + tanh    (out rows padded to 8)
    z = jnp.tanh(
        jnp.dot(p_ref[48:56, 0:8], z, preferred_element_type=jnp.float32)
        + p_ref[BIAS_ROW:BIAS_ROW + 8, 3:4])                        # (8,  TB)
    # oupt: Linear(4 -> 1), no activation (row 0 is the real output)
    z = (jnp.dot(p_ref[64:72, 0:8], z, preferred_element_type=jnp.float32)
         + p_ref[BIAS_ROW:BIAS_ROW + 8, 4:5])                       # (8,  TB)

    o_ref[...] = z[0:1, :].astype(o_ref.dtype)


def pack_params(params):
    """Pack [(W_in_out, b_1_out)] into one (96, 128) f32 slab (zero padded)."""
    slab = jnp.zeros((SLAB_ROWS, SLAB_COLS), jnp.float32)
    for i, (w, b) in enumerate(params):
        din, dout = w.shape
        slab = slab.at[16 * i:16 * i + dout, :din].set(w.T.astype(jnp.float32))
        slab = slab.at[BIAS_ROW:BIAS_ROW + dout, i].set(
            b.reshape(-1).astype(jnp.float32))
    return slab


def net_forward(x, slab, *, batch_tile=2048):
    """x: (B, 8) float32, slab: packed params from pack_params. Returns (B, 1)."""
    B, din = x.shape
    assert din == LAYER_DIMS[0][0], din

    xt = x.T.astype(jnp.float32)                    # (8, B): batch on lanes
    tb = batch_tile if B >= batch_tile else _round_up(B, 128)
    Bp = _round_up(B, tb)
    if Bp != B:
        xt = jnp.pad(xt, ((0, 0), (0, Bp - B)))     # pad batch to full tiles

    out = pl.pallas_call(
        mlp_kernel,
        out_shape=jax.ShapeDtypeStruct((1, Bp), jnp.float32),
        grid_spec=pltpu.PrefetchScalarGridSpec(
            num_scalar_prefetch=0,
            grid=(Bp // tb,),
            in_specs=[
                # parameter slab: constant block index -> resident in VMEM
                pl.BlockSpec((SLAB_ROWS, SLAB_COLS), lambda i: (0, 0)),
                # activations: one lane-dense batch tile per grid step
                pl.BlockSpec((8, tb), lambda i: (0, i)),
            ],
            out_specs=pl.BlockSpec((1, tb), lambda i: (0, i)),
        ),
        compiler_params=pltpu.CompilerParams(
            dimension_semantics=("parallel",),      # megacore sharding on v7x
        ),
    )(slab, xt)

    return out[:, :B].T                             # back to (B, 1)


def init_params(key):
    """Deterministic synthetic init (shapes match the PyTorch module)."""
    params = []
    for i, (din, dout) in enumerate(LAYER_DIMS):
        kw, kb = jax.random.split(jax.random.fold_in(key, i))
        bound = 1.0 / jnp.sqrt(din)
        w = jax.random.uniform(kw, (din, dout), jnp.float32, -bound, bound)
        b = jax.random.uniform(kb, (1, dout), jnp.float32, -bound, bound)
        params.append((w, b))
    return params


def net_ref(x, params):
    """Pure-JAX reference for correctness checking."""
    z = x
    for w, b in params[:-1]:
        z = jnp.tanh(z @ w + b)
    w, b = params[-1]
    return z @ w + b


if __name__ == "__main__":
    key = jax.random.PRNGKey(0)
    kx, kp = jax.random.split(key)

    params = init_params(kp)
    slab = pack_params(params)

    fwd = jax.jit(net_forward, static_argnames=("batch_tile",))

    # Small batch (single grid step; batch padded to 128 lanes).
    B = 8
    x = jax.random.normal(kx, (B, 8), jnp.float32)
    out = jax.block_until_ready(fwd(x, slab))
    ref = net_ref(x, params)
    assert out.shape == (B, 1), out.shape
    assert jnp.allclose(out, ref, atol=1e-5, rtol=1e-5), (out, ref)

    # Larger batch with a small tile to exercise the multi-step batch grid
    # (tile=256 -> 4 grid steps) plus the padding path.
    B2 = 1000
    x2 = jax.random.normal(jax.random.fold_in(kx, 1), (B2, 8), jnp.float32)
    out2 = jax.block_until_ready(fwd(x2, slab, batch_tile=256))
    ref2 = net_ref(x2, params)
    assert out2.shape == (B2, 1), out2.shape
    assert jnp.allclose(out2, ref2, atol=1e-5, rtol=1e-5)

    # Same batch through the default (2048-lane) tile path.
    out3 = jax.block_until_ready(fwd(x2, slab))
    assert jnp.allclose(out3, ref2, atol=1e-5, rtol=1e-5)

    print("KERNEL_OK")
</pallas_src>

<mosaic_0001>
module attributes {stable_mosaic.version = 11 : i64} {
  func.func @mlp_kernel(%arg0: i32, %arg1: memref<96x128xf32, #tpu.memory_space<vmem>>, %arg2: memref<8x128xf32, #tpu.memory_space<vmem>>, %arg3: memref<1x128xf32, #tpu.memory_space<vmem>>) attributes {dimension_semantics = [#tpu.dimension_semantics<parallel>], iteration_bounds = array<i64: 1>, scalar_prefetch = 0 : i64, scratch_operands = 0 : i64, tpu.core_type = #tpu.core_type<tc>, window_params = [{pipeline_mode = #tpu.pipeline_mode<synchronous>, transform_indices = @transform_0, window_bounds = array<i64: 96, 128>}, {transform_indices = @transform_1, window_bounds = array<i64: 8, 128>}, {transform_indices = @transform_2, window_bounds = array<i64: 1, 128>}]} {
    %c0 = arith.constant 0 : index
    %c0_0 = arith.constant 0 : index
    %0 = vector.load %arg2[%c0, %c0_0] : memref<8x128xf32, #tpu.memory_space<vmem>>, vector<8x128xf32>
    %c0_1 = arith.constant 0 : index
    %c0_2 = arith.constant 0 : index
    %1 = vector.load %arg1[%c0_1, %c0_2] : memref<96x128xf32, #tpu.memory_space<vmem>>, vector<16x8xf32>
    %cst = arith.constant dense<0.000000e+00> : vector<16x128xf32>
    %2 = tpu.matmul %1, %0, %cst {dimension_numbers = #tpu.dot_dimension_numbers<[1], [0], [0], [1], [0, 0, 1, 1], [], []>} : vector<16x8xf32>, vector<8x128xf32>, vector<16x128xf32> -> vector<16x128xf32>
    %c80 = arith.constant 80 : index
    %c0_3 = arith.constant 0 : index
    %3 = vector.load %arg1[%c80, %c0_3] : memref<96x128xf32, #tpu.memory_space<vmem>>, vector<16x1xf32>
    %4 = vector.broadcast %3 : vector<16x1xf32> to vector<16x128xf32>
    %5 = arith.addf %2, %4 : vector<16x128xf32>
    %6 = math.tanh %5 : vector<16x128xf32>
    %c16 = arith.constant 16 : index
    %c0_4 = arith.constant 0 : index
    %7 = vector.load %arg1[%c16, %c0_4] : memref<96x128xf32, #tpu.memory_space<vmem>>, vector<16x16xf32>
    %cst_5 = arith.constant dense<0.000000e+00> : vector<16x128xf32>
    %8 = tpu.matmul %7, %6, %cst_5 {dimension_numbers = #tpu.dot_dimension_numbers<[1], [0], [0], [1], [0, 0, 1, 1], [], []>} : vector<16x16xf32>, vector<16x128xf32>, vector<16x128xf32> -> vector<16x128xf32>
    %c80_6 = arith.constant 80 : index
    %c1 = arith.constant 1 : index
    %9 = vector.load %arg1[%c80_6, %c1] : memref<96x128xf32, #tpu.memory_space<vmem>>, vector<16x1xf32>
    %10 = vector.broadcast %9 : vector<16x1xf32> to vector<16x128xf32>
    %11 = arith.addf %8, %10 : vector<16x128xf32>
    %12 = math.tanh %11 : vector<16x128xf32>
    %c32 = arith.constant 32 : index
    %c0_7 = arith.constant 0 : index
    %13 = vector.load %arg1[%c32, %c0_7] : memref<96x128xf32, #tpu.memory_space<vmem>>, vector<8x16xf32>
    %cst_8 = arith.constant dense<0.000000e+00> : vector<8x128xf32>
    %14 = tpu.matmul %13, %12, %cst_8 {dimension_numbers = #tpu.dot_dimension_numbers<[1], [0], [0], [1], [0, 0, 1, 1], [], []>} : vector<8x16xf32>, vector<16x128xf32>, vector<8x128xf32> -> vector<8x128xf32>
    %c80_9 = arith.constant 80 : index
    %c2 = arith.constant 2 : index
    %15 = vector.load %arg1[%c80_9, %c2] : memref<96x128xf32, #tpu.memory_space<vmem>>, vector<8x1xf32>
    %16 = vector.broadcast %15 : vector<8x1xf32> to vector<8x128xf32>
    %17 = arith.addf %14, %16 : vector<8x128xf32>
    %18 = math.tanh %17 : vector<8x128xf32>
    %c48 = arith.constant 48 : index
    %c0_10 = arith.constant 0 : index
    %19 = vector.load %arg1[%c48, %c0_10] : memref<96x128xf32, #tpu.memory_space<vmem>>, vector<8x8xf32>
    %cst_11 = arith.constant dense<0.000000e+00> : vector<8x128xf32>
    %20 = tpu.matmul %19, %18, %cst_11 {dimension_numbers = #tpu.dot_dimension_numbers<[1], [0], [0], [1], [0, 0, 1, 1], [], []>} : vector<8x8xf32>, vector<8x128xf32>, vector<8x128xf32> -> vector<8x128xf32>
    %c80_12 = arith.constant 80 : index
    %c3 = arith.constant 3 : index
    %21 = vector.load %arg1[%c80_12, %c3] : memref<96x128xf32, #tpu.memory_space<vmem>>, vector<8x1xf32>
    %22 = vector.broadcast %21 : vector<8x1xf32> to vector<8x128xf32>
    %23 = arith.addf %20, %22 : vector<8x128xf32>
    %24 = math.tanh %23 : vector<8x128xf32>
    %c64 = arith.constant 64 : index
    %c0_13 = arith.constant 0 : index
    %25 = vector.load %arg1[%c64, %c0_13] : memref<96x128xf32, #tpu.memory_space<vmem>>, vector<8x8xf32>
    %cst_14 = arith.constant dense<0.000000e+00> : vector<8x128xf32>
    %26 = tpu.matmul %25, %24, %cst_14 {dimension_numbers = #tpu.dot_dimension_numbers<[1], [0], [0], [1], [0, 0, 1, 1], [], []>} : vector<8x8xf32>, vector<8x128xf32>, vector<8x128xf32> -> vector<8x128xf32>
    %c80_15 = arith.constant 80 : index
    %c4 = arith.constant 4 : index
    %27 = vector.load %arg1[%c80_15, %c4] : memref<96x128xf32, #tpu.memory_space<vmem>>, vector<8x1xf32>
    %28 = vector.broadcast %27 : vector<8x1xf32> to vector<8x128xf32>
    %29 = arith.addf %26, %28 : vector<8x128xf32>
    %30 = vector.extract_strided_slice %29 {offsets = [0, 0], sizes = [1, 128], strides = [1, 1]} : vector<8x128xf32> to vector<1x128xf32>
    %c0_16 = arith.constant 0 : index
    %c0_17 = arith.constant 0 : index
    %31 = vector.load %arg3[%c0_16, %c0_17] : memref<1x128xf32, #tpu.memory_space<vmem>>, vector<1x128xf32>
    tpu.vector_store %arg3[%c0_16, %c0_17], %30 {strides = array<i32>} : memref<1x128xf32, #tpu.memory_space<vmem>>, vector<1x128xf32>,
    return
  }
  func.func @transform_0(%arg0: i32) -> (i32, i32) {
    %c0_i32 = arith.constant 0 : i32
    %c0_i32_0 = arith.constant 0 : i32
    %c0_i32_1 = arith.constant 0 : i32
    return %c0_i32, %c0_i32_0 : i32, i32
  }
  func.func @transform_1(%arg0: i32) -> (i32, i32) {
    %c0_i32 = arith.constant 0 : i32
    %c0_i32_0 = arith.constant 0 : i32
    return %c0_i32, %arg0 : i32, i32
  }
  func.func @transform_2(%arg0: i32) -> (i32, i32) {
    %c0_i32 = arith.constant 0 : i32
    %c0_i32_0 = arith.constant 0 : i32
    return %c0_i32, %arg0 : i32, i32
  }
}

</mosaic_0001>

<bundles_post_ra>
// kernel: net_forward.1
= control target key start
LH: loop header
LB: loop body
LE: loop exit
PB: predicated region body
PF: predicated region fallthrough
CT: control target
= control target key end

     0   :  { %7 = vsyncpa [#allocation3], 0  ;;  %s562_s9 = smov [#allocation2]   ;;  %s613_s0 = inlined_call_operand.hbm [shape: f32[96,128], index: 0, kind: input, shape index: {}]   ;;  %s614_s1 = inlined_call_operand.vmem [shape: f32[8,128], index: 1, kind: input, shape index: {}]   ;;  %s615_s2 = inlined_call_operand.vmem [shape: f32[1,128], index: 2, kind: output, shape index: {}]  }
   0x1   :  { %s13_s10 = sshll.u32 %s562_s9, 4  ;;  %s14_s10 = int_to_ptr.vmem [resolvable:$true] %s13_s10 }
   0x2   :  { %s548_s11 = scalar_lea.vmem %s14_s10, 1536  ;;  %p553_p1 = scmp.lt.s32.totalorder %s14_s10, %s14_s10 }
   0x3   :  { %p549_p0 = scmp.ne.s32.totalorder %s14_s10, %s548_s11  ;;  %p554_p2 = scmp.lt.s32.totalorder %s548_s11, %s548_s11 }
   0x5   :  { %p555_p3 = por %p554_p2, %p553_p1 }
   0x7   :  { %p556_p4 = pnand %p555_p3, %p549_p0 }
   0x9   :  { %559 = shalt.err (!%p556_p4)
}
   0xa   :  { %s563_s12 = smov 128   ;;  %s564_s13 = smov 8  }
   0xb   :  { %19 = dma.hbm_to_vmem [thread:$0]  %s613_s0, 1536, %s14_s10, [#allocation3], %s563_s12, %s563_s12, %s564_s13  }
   0xc   :  { %560 = dma.done.wait [#allocation3], 1536  }
   0xd   :  { %561 = vsyncadd [#allocation3], 4294965760  ;;  %v565_v0 = vmov 0   ;;  %vm40_vm0 = vcmask 64512   ;;  %v25_v1 = vld [vmem:[%s614_s1] sm:$0xff]  ;;  %v27_v3 = vld [vmem:[#allocation2 + $0x8] sm:$0xff] }
   0xe   :  { %522 = vset.pattern.permute.xlu0 %v565_v0  ;;  %v26_v2 = vld [vmem:[#allocation2] sm:$0xff]  ;;  %483 = vmatprep.subr.mxu0 %v25_v1  ;;  %v29_v4 = vld [vmem:[#allocation2 + $0x58] sm:$0xff]  ;;  %v595_v5 = vld [vmem:[#allocation2 + $0x50] sm:$0xff]  ;;  %vm134_vm1 = vcmask 130048   ;;  %v566_v7 = vmov 1   ;;  %v567_v17 = vmov 0.0  }
   0xf   :  { %485 = vmatprep.mubr.msk.f32.mxu0 %vm40_vm0, %v26_v2  ;;  %484 = vmatpush3.msra.mxu0 %v25_v1  ;;  %v124_v6 = vld [vmem:[#allocation2 + $0x10] sm:$0xff]  ;;  %v125_v16 = vld [vmem:[#allocation2 + $0x18] sm:$0xff]  ;;  %vm568_vm2 = vmmov 0   ;;  %v569_v18 = vmov 2   ;;  %v218_v26 = vld [vmem:[#allocation2 + $0x20] sm:$0xff]  ;;  %v570_v28 = vmov 3  }
  0x10   :  { %37 = vperm.xlu0 %522, %v29_v4   ;;  %486 = vmatmul.mubr.msk.f32.vlgmr.msra.gmra.mxu0 %vm40_vm0, %v27_v3  ;;  %v299_v33 = vld [vmem:[#allocation2 + $0x30] sm:$0xff]  ;;  %v571_v35 = vmov 4   ;;  %v378_v40 = vld [vmem:[#allocation2 + $0x40] sm:$0xff] }
  0x11   :  { %492 = vmatprep.mubr.msk.f32.mxu1 %vm134_vm1, %v124_v6  ;;  %523 = vset.pattern.permute.xlu1 %v566_v7 }
  0x12   :  { %131 = vperm.xlu1 %523, %v29_v4   ;;  %495 = vmatprep.subr.mxu0 %v567_v17 }
  0x13   :  { %499 = vmatprep.mubr.msk.f32.mxu0 %vm568_vm2, %v567_v17 }
  0x14   :  { %32 = vperm.xlu0 %522, %v595_v5  }
  0x16   :  { %127 = vperm.xlu1 %523, %v595_v5  }
  0x18   :  { %524 = vset.pattern.permute.xlu0 %v569_v18 }
  0x19   :  { %222 = vperm.xlu0 %524, %v595_v5  }
  0x1a   :  { %525 = vset.pattern.permute.xlu1 %v570_v28 }
  0x1b   :  { %301 = vperm.xlu1 %525, %v595_v5  }
  0x1d   :  { %527 = vset.pattern.permute.xlu0 %v571_v35 }
  0x1f   :  { %526 = vset.pattern.permute.xlu1 %v571_v35 }
  0x20   :  { %380 = vperm.xlu1 %526, %v595_v5  }
  0x8b   :  { %v38_v8 = vpop.permute.xlu0 %37 }
  0x8d   :  { %v132_v19 = vpop.permute.xlu1 %131 }
  0x8f   :  { %v33_v11 = vpop.permute.xlu0 %32 }
  0x91   :  { %v128_v22 = vpop.permute.xlu1 %127 }
  0x94   :  { %v223_v29 = vpop.permute.xlu0 %222 }
  0x96   :  { %v302_v36 = vpop.permute.xlu1 %301 }
  0x9b   :  { %v381_v42 = vpop.permute.xlu1 %380 }
  0xd0   :  { %v487_v9 = vpop.f32.mrf.mxu0 }
  0xd1   :  { %v119_v10 = vadd.f32 %v487_v9, %v38_v8 }
  0xd2   :  { %v113_v12 = vpop.f32.mrf.mxu0 }
  0xd3   :  { %528 = vtanh.f32 %v119_v10  ;;  %v114_v13 = vadd.f32 %v113_v12, %v33_v11 }
  0xd5   :  { %530 = vtanh.f32 %v114_v13 }
  0xe0   :  { %v529_v14 = vpop.eup %528 }
  0xe1   :  { %488 = vmatprep.subr.mxu1 %v529_v14 }
  0xe2   :  { %v531_v15 = vpop.eup %530  ;;  %489 = vmatpush3.msra.mxu1 %v529_v14 }
  0xe3   :  { %490 = vmatprep.subr.mxu1 %v531_v15 }
  0xe4   :  { %491 = vmatpush3.msra.mxu1 %v531_v15 }
  0xe5   :  { %493 = vmatmul.mubr.msk.f32.vlgmr.msra.gmra.mxu1 %vm134_vm1, %v125_v16  ;;  %502 = vmatprep.subr.mxu1 %v567_v17 }
  0xe6   :  { %504 = vmatprep.mubr.msk.f32.mxu1 %vm568_vm2, %v567_v17 }
 0x1a5   :  { %v494_v20 = vpop.f32.mrf.mxu1 }
 0x1a6   :  { %v213_v21 = vadd.f32 %v494_v20, %v132_v19 }
 0x1a7   :  { %v207_v23 = vpop.f32.mrf.mxu1 }
 0x1a8   :  { %532 = vtanh.f32 %v213_v21  ;;  %v208_v24 = vadd.f32 %v207_v23, %v128_v22 }
 0x1aa   :  { %534 = vtanh.f32 %v208_v24 }
 0x1b5   :  { %v533_v25 = vpop.eup %532 }
 0x1b6   :  { %496 = vmatpush3.msra.mxu0 %v533_v25 }
 0x1b7   :  { %v535_v27 = vpop.eup %534  ;;  %497 = vmatprep.subr.mxu0 %v567_v17 }
 0x1b8   :  { %498 = vmatpush3.msra.mxu0 %v535_v27 }
 0x1b9   :  { %500 = vmatmul.mubr.msk.f32.vlgmr.msra.gmra.mxu0 %vm134_vm1, %v218_v26  ;;  %507 = vmatprep.subr.mxu0 %v567_v17 }
 0x1ba   :  { %509 = vmatprep.mubr.msk.f32.mxu0 %vm568_vm2, %v567_v17 }
 0x279   :  { %v294_v30 = vpop.f32.mrf.mxu0 }
 0x27a   :  { %v295_v31 = vadd.f32 %v294_v30, %v223_v29 }
 0x27b   :  { %v501_v32 = vpop.f32.mrf.mxu0 }
 0x27c   :  { %536 = vtanh.f32 %v295_v31 }
 0x289   :  { %v537_v34 = vpop.eup %536 }
 0x28a   :  { %503 = vmatpush3.msra.mxu1 %v537_v34 }
 0x28b   :  { %505 = vmatmul.mubr.msk.f32.vlgmr.msra.gmra.mxu1 %vm40_vm0, %v299_v33 }
 0x34b   :  { %v373_v37 = vpop.f32.mrf.mxu1 }
 0x34c   :  { %v374_v38 = vadd.f32 %v373_v37, %v302_v36 }
 0x34d   :  { %v506_v39 = vpop.f32.mrf.mxu1 }
 0x34e   :  { %538 = vtanh.f32 %v374_v38 }
 0x35b   :  { %v539_v41 = vpop.eup %538 }
 0x35c   :  { %508 = vmatpush3.msra.mxu0 %v539_v41 }
 0x35d   :  { %510 = vmatmul.mubr.msk.f32.vlgmr.msra.gmra.mxu0 %vm40_vm0, %v378_v40 }
 0x41d   :  { %v452_v43 = vpop.f32.mrf.mxu0 }
 0x41e   :  { %v453_v44 = vadd.f32 %v452_v43, %v381_v42 }
 0x41f   :  { %v511_v45 = vpop.f32.mrf.mxu0 }
 0x420   :  { %456 = vst [vmem:[%s615_s2] sm:$0x1] %v453_v44 }
 0x421   :  { %461 = vsyncpa [#allocation3], 1 }

</bundles_post_ra>
